<compile_context>
chip_gen: v5e
topology: v5e:2x2
jax: 0.10.0
libtpu: 0.0.40
codegen_flags: <defaults>
</compile_context>

<pallas_src>
import functools

import jax
import jax.numpy as jnp
from jax.experimental import pallas as pl
from jax.experimental.pallas import tpu as pltpu  # noqa: F401  (TPU backend)

SEQUENCE_LENGTH = 15   # in-features of conv1 (matches the PyTorch module)
EMBEDDING_SIZE = 15
OUT_CHANNELS = 4

_OUT_PAD = 128         # lane-dense output width (unmasked vst)


# ----------------------------- Pallas kernel ------------------------------ #
def _gcnae_fused_kernel(a_ref, x_ref, w12_ref, b12_ref, w3_ref, b3_ref, o_ref):
    """Fused: out = A @ relu(A @ relu(A @ (X W1) + b1) W2 + b2) W3 + b3."""
    cdt = a_ref.dtype  # MXU operand dtype (bf16 default); accumulate in f32.

    def layer(h_in, w, b, relu):
        # Feature transform (MXU), f32 accumulation.
        xw = jnp.dot(h_in.astype(cdt), w, preferred_element_type=jnp.float32)
        # Neighborhood aggregation (MXU), f32 accumulation.  A_hat is re-read
        # from VMEM each layer instead of being pinned in vregs.
        h = jnp.dot(a_ref[...], xw.astype(cdt),
                    preferred_element_type=jnp.float32)
        h = h + b                    # bias broadcast over nodes (f32)
        if relu:
            h = jnp.maximum(h, 0.0)  # elementwise in f32 (v5e-safe)
        return h

    h = layer(x_ref[...], w12_ref[0], b12_ref[0], relu=True)
    h = layer(h,          w12_ref[1], b12_ref[1], relu=True)
    h = layer(h,          w3_ref[...], b3_ref[...], relu=False)
    o_ref[...] = h.astype(o_ref.dtype)


def gcnae_fused(a_hat, x, kparams, *, compute_dtype=jnp.bfloat16):
    """Whole GCNAE forward (3 fused GCN layers) in one pallas_call."""
    n = a_hat.shape[0]
    f_in = x.shape[1]
    cdt = compute_dtype

    w12, b12, w3, b3 = kparams["w12"], kparams["b12"], kparams["w3"], kparams["b3"]

    out_p = pl.pallas_call(
        _gcnae_fused_kernel,
        out_shape=jax.ShapeDtypeStruct((n, _OUT_PAD), jnp.float32),
        in_specs=[
            pl.BlockSpec((n, n), lambda: (0, 0)),        # A_hat (full extent, unpadded)
            pl.BlockSpec((n, f_in), lambda: (0, 0)),     # X     (full extent, unpadded)
            pl.BlockSpec(w12.shape, lambda: (0, 0, 0)),  # W1|W2 stacked (2, F, F)
            pl.BlockSpec(b12.shape, lambda: (0, 0, 0)),  # b1|b2 stacked (2, 1, F)
            pl.BlockSpec(w3.shape, lambda: (0, 0)),      # W3 (F, 128) out-padded
            pl.BlockSpec(b3.shape, lambda: (0, 0)),      # b3 (1, 128)
        ],
        out_specs=pl.BlockSpec((n, _OUT_PAD), lambda: (0, 0)),
    )(a_hat.astype(cdt), x.astype(cdt), w12, b12, w3, b3)

    # Single narrow slice at the very end (outside the kernel).
    return out_p[:, :OUT_CHANNELS]


# ------------------------------- glue (JAX) -------------------------------- #
def dense_gcn_norm(edge_index, num_nodes):
    """Dense A_hat = D^-1/2 (A + remaining self loops) D^-1/2 from (2, E) edges."""
    src = edge_index[0]
    dst = edge_index[1]
    # Scatter-free adjacency build: one-hot matmul (XLA scatter is serial on TPU).
    dst_oh = jax.nn.one_hot(dst, num_nodes, dtype=jnp.float32)   # (E, N)
    src_oh = jax.nn.one_hot(src, num_nodes, dtype=jnp.float32)   # (E, N)
    a = dst_oh.T @ src_oh                                        # A[dst, src] += 1
    # add_remaining_self_loops (PyG): add a self loop only where none exists.
    diag = jnp.diagonal(a)
    a = a + jnp.diag(jnp.where(diag == 0.0, 1.0, 0.0))
    deg = a.sum(axis=1)
    d_inv_sqrt = jnp.where(deg > 0, 1.0 / jnp.sqrt(deg), 0.0)
    return d_inv_sqrt[:, None] * a * d_inv_sqrt[None, :]


def init_params(key, in_channels):
    # in_channels kept for parity with the PyTorch __init__ signature, but
    # (as in the reference) conv1 actually uses sequence_length as f_in.
    del in_channels

    def glorot(k, f_in, f_out):
        limit = jnp.sqrt(6.0 / (f_in + f_out))
        return jax.random.uniform(k, (f_in, f_out), jnp.float32, -limit, limit)

    k1, k2, k3 = jax.random.split(key, 3)
    return {
        "w1": glorot(k1, SEQUENCE_LENGTH, EMBEDDING_SIZE),
        "b1": jnp.zeros((EMBEDDING_SIZE,), jnp.float32),
        "w2": glorot(k2, EMBEDDING_SIZE, EMBEDDING_SIZE),
        "b2": jnp.zeros((EMBEDDING_SIZE,), jnp.float32),
        "w3": glorot(k3, EMBEDDING_SIZE, OUT_CHANNELS),
        "b3": jnp.zeros((OUT_CHANNELS,), jnp.float32),
    }


def prepare_params(params, *, compute_dtype=jnp.bfloat16):
    """One-time packing of weights/biases for the fused kernel (cache + reuse).

    Done once per parameter set, NOT per forward call: stacks W1/W2 and b1/b2,
    pads W3/b3 output dim to a lane-dense 128, and casts MXU operands to the
    compute dtype (biases stay f32: they feed the f32 accumulator).
    """
    cdt = compute_dtype
    w12 = jnp.stack([params["w1"], params["w2"]], axis=0).astype(cdt)   # (2, F, F)
    b12 = jnp.stack([params["b1"], params["b2"]], axis=0)[:, None, :]   # (2, 1, F)
    f_hid, f_out = params["w3"].shape
    w3 = (jnp.zeros((f_hid, _OUT_PAD), cdt)
          .at[:, :f_out].set(params["w3"].astype(cdt)))                 # (F, 128)
    b3 = jnp.zeros((1, _OUT_PAD), jnp.float32).at[0, :f_out].set(params["b3"])
    return {"w12": w12, "b12": b12, "w3": w3, "b3": b3}


def gcnae_forward(kparams, x, edge_index, batch_index, *,
                  compute_dtype=jnp.bfloat16):
    # batch_index is unused in the reference forward (no pooling layer).
    del batch_index
    a_hat = dense_gcn_norm(edge_index, x.shape[0])
    return gcnae_fused(a_hat, x, kparams, compute_dtype=compute_dtype)


def gcnae_forward_ref(params, x, edge_index, batch_index):
    """Pure-JAX reference (same math, no Pallas) for correctness checks."""
    del batch_index
    a_hat = dense_gcn_norm(edge_index, x.shape[0])
    h = jax.nn.relu(a_hat @ (x @ params["w1"]) + params["b1"])
    h = jax.nn.relu(a_hat @ (h @ params["w2"]) + params["b2"])
    return a_hat @ (h @ params["w3"]) + params["b3"]


# ---------------------------------- main ----------------------------------- #
if __name__ == "__main__":
    key = jax.random.PRNGKey(0)
    k_params, k_x, k_edges = jax.random.split(key, 3)

    num_nodes = 16
    num_edges = 32

    params = init_params(k_params, in_channels=SEQUENCE_LENGTH)
    x = jax.random.normal(k_x, (num_nodes, SEQUENCE_LENGTH), jnp.float32)
    edge_index = jax.random.randint(
        k_edges, (2, num_edges), 0, num_nodes, dtype=jnp.int32
    )
    batch_index = jnp.zeros((num_nodes,), jnp.int32)

    ref = gcnae_forward_ref(params, x, edge_index, batch_index)

    # Default path: bf16 MXU operands, f32 accumulation (loose tolerance).
    kparams_bf16 = jax.block_until_ready(
        prepare_params(params, compute_dtype=jnp.bfloat16))   # one-time packing
    fwd_bf16 = jax.jit(gcnae_forward)
    out = jax.block_until_ready(fwd_bf16(kparams_bf16, x, edge_index, batch_index))
    assert out.shape == (num_nodes, OUT_CHANNELS)
    assert jnp.allclose(out, ref, atol=2e-1, rtol=2e-1), "bf16 path mismatch"

    # f32 operand path: near-exact vs. reference.
    kparams_f32 = jax.block_until_ready(
        prepare_params(params, compute_dtype=jnp.float32))
    fwd_f32 = jax.jit(functools.partial(gcnae_forward,
                                        compute_dtype=jnp.float32))
    out_f32 = jax.block_until_ready(
        fwd_f32(kparams_f32, x, edge_index, batch_index))
    assert out_f32.shape == (num_nodes, OUT_CHANNELS)
    assert jnp.allclose(out_f32, ref, atol=1e-3, rtol=1e-3), "f32 path mismatch"

    print("KERNEL_OK")
</pallas_src>

<mosaic_0001>
module attributes {stable_mosaic.version = 11 : i64} {
  func.func @_gcnae_fused_kernel(%arg0: memref<16x16xbf16, #tpu.memory_space<vmem>>, %arg1: memref<16x15xbf16, #tpu.memory_space<vmem>>, %arg2: memref<2x15x15xbf16, #tpu.memory_space<vmem>>, %arg3: memref<2x1x15xf32, #tpu.memory_space<vmem>>, %arg4: memref<15x128xbf16, #tpu.memory_space<vmem>>, %arg5: memref<1x128xf32, #tpu.memory_space<vmem>>, %arg6: memref<16x128xf32, #tpu.memory_space<vmem>>) attributes {dimension_semantics = [], scalar_prefetch = 0 : i64, scratch_operands = 0 : i64, tpu.core_type = #tpu.core_type<tc>} {
    %c0 = arith.constant 0 : index
    %c0_0 = arith.constant 0 : index
    %0 = vector.load %arg1[%c0, %c0_0] : memref<16x15xbf16, #tpu.memory_space<vmem>>, vector<16x15xbf16>
    %c0_1 = arith.constant 0 : index
    %c0_2 = arith.constant 0 : index
    %c0_3 = arith.constant 0 : index
    %1 = vector.load %arg2[%c0_1, %c0_2, %c0_3] : memref<2x15x15xbf16, #tpu.memory_space<vmem>>, vector<1x15x15xbf16>
    %2 = vector.shape_cast %1 : vector<1x15x15xbf16> to vector<15x15xbf16>
    %c0_4 = arith.constant 0 : index
    %c0_5 = arith.constant 0 : index
    %c0_6 = arith.constant 0 : index
    %3 = vector.load %arg3[%c0_4, %c0_5, %c0_6] : memref<2x1x15xf32, #tpu.memory_space<vmem>>, vector<1x1x15xf32>
    %4 = vector.shape_cast %3 : vector<1x1x15xf32> to vector<1x15xf32>
    %cst = arith.constant dense<0.000000e+00> : vector<16x15xf32>
    %5 = tpu.matmul %0, %2, %cst {dimension_numbers = #tpu.dot_dimension_numbers<[1], [0], [0], [1], [0, 0, 1, 1], [], []>} : vector<16x15xbf16>, vector<15x15xbf16>, vector<16x15xf32> -> vector<16x15xf32>
    %c0_7 = arith.constant 0 : index
    %c0_8 = arith.constant 0 : index
    %6 = vector.load %arg0[%c0_7, %c0_8] : memref<16x16xbf16, #tpu.memory_space<vmem>>, vector<16x16xbf16>
    %7 = arith.truncf %5 : vector<16x15xf32> to vector<16x15xbf16>
    %cst_9 = arith.constant dense<0.000000e+00> : vector<16x15xf32>
    %8 = tpu.matmul %6, %7, %cst_9 {dimension_numbers = #tpu.dot_dimension_numbers<[1], [0], [0], [1], [0, 0, 1, 1], [], []>} : vector<16x16xbf16>, vector<16x15xbf16>, vector<16x15xf32> -> vector<16x15xf32>
    %9 = vector.broadcast %4 : vector<1x15xf32> to vector<16x15xf32>
    %10 = arith.addf %8, %9 : vector<16x15xf32>
    %cst_10 = arith.constant 0.000000e+00 : f32
    %11 = vector.broadcast %cst_10 : f32 to vector<16x15xf32>
    %12 = arith.maximumf %10, %11 : vector<16x15xf32>
    %c1 = arith.constant 1 : index
    %c0_11 = arith.constant 0 : index
    %c0_12 = arith.constant 0 : index
    %13 = vector.load %arg2[%c1, %c0_11, %c0_12] : memref<2x15x15xbf16, #tpu.memory_space<vmem>>, vector<1x15x15xbf16>
    %14 = vector.shape_cast %13 : vector<1x15x15xbf16> to vector<15x15xbf16>
    %c1_13 = arith.constant 1 : index
    %c0_14 = arith.constant 0 : index
    %c0_15 = arith.constant 0 : index
    %15 = vector.load %arg3[%c1_13, %c0_14, %c0_15] : memref<2x1x15xf32, #tpu.memory_space<vmem>>, vector<1x1x15xf32>
    %16 = vector.shape_cast %15 : vector<1x1x15xf32> to vector<1x15xf32>
    %17 = arith.truncf %12 : vector<16x15xf32> to vector<16x15xbf16>
    %cst_16 = arith.constant dense<0.000000e+00> : vector<16x15xf32>
    %18 = tpu.matmul %17, %14, %cst_16 {dimension_numbers = #tpu.dot_dimension_numbers<[1], [0], [0], [1], [0, 0, 1, 1], [], []>} : vector<16x15xbf16>, vector<15x15xbf16>, vector<16x15xf32> -> vector<16x15xf32>
    %c0_17 = arith.constant 0 : index
    %c0_18 = arith.constant 0 : index
    %19 = vector.load %arg0[%c0_17, %c0_18] : memref<16x16xbf16, #tpu.memory_space<vmem>>, vector<16x16xbf16>
    %20 = arith.truncf %18 : vector<16x15xf32> to vector<16x15xbf16>
    %cst_19 = arith.constant dense<0.000000e+00> : vector<16x15xf32>
    %21 = tpu.matmul %19, %20, %cst_19 {dimension_numbers = #tpu.dot_dimension_numbers<[1], [0], [0], [1], [0, 0, 1, 1], [], []>} : vector<16x16xbf16>, vector<16x15xbf16>, vector<16x15xf32> -> vector<16x15xf32>
    %22 = vector.broadcast %16 : vector<1x15xf32> to vector<16x15xf32>
    %23 = arith.addf %21, %22 : vector<16x15xf32>
    %cst_20 = arith.constant 0.000000e+00 : f32
    %24 = vector.broadcast %cst_20 : f32 to vector<16x15xf32>
    %25 = arith.maximumf %23, %24 : vector<16x15xf32>
    %c0_21 = arith.constant 0 : index
    %c0_22 = arith.constant 0 : index
    %26 = vector.load %arg4[%c0_21, %c0_22] : memref<15x128xbf16, #tpu.memory_space<vmem>>, vector<15x128xbf16>
    %c0_23 = arith.constant 0 : index
    %c0_24 = arith.constant 0 : index
    %27 = vector.load %arg5[%c0_23, %c0_24] : memref<1x128xf32, #tpu.memory_space<vmem>>, vector<1x128xf32>
    %28 = arith.truncf %25 : vector<16x15xf32> to vector<16x15xbf16>
    %cst_25 = arith.constant dense<0.000000e+00> : vector<16x128xf32>
    %29 = tpu.matmul %28, %26, %cst_25 {dimension_numbers = #tpu.dot_dimension_numbers<[1], [0], [0], [1], [0, 0, 1, 1], [], []>} : vector<16x15xbf16>, vector<15x128xbf16>, vector<16x128xf32> -> vector<16x128xf32>
    %c0_26 = arith.constant 0 : index
    %c0_27 = arith.constant 0 : index
    %30 = vector.load %arg0[%c0_26, %c0_27] : memref<16x16xbf16, #tpu.memory_space<vmem>>, vector<16x16xbf16>
    %31 = arith.truncf %29 : vector<16x128xf32> to vector<16x128xbf16>
    %cst_28 = arith.constant dense<0.000000e+00> : vector<16x128xf32>
    %32 = tpu.matmul %30, %31, %cst_28 {dimension_numbers = #tpu.dot_dimension_numbers<[1], [0], [0], [1], [0, 0, 1, 1], [], []>} : vector<16x16xbf16>, vector<16x128xbf16>, vector<16x128xf32> -> vector<16x128xf32>
    %33 = vector.broadcast %27 : vector<1x128xf32> to vector<16x128xf32>
    %34 = arith.addf %32, %33 : vector<16x128xf32>
    %c0_29 = arith.constant 0 : index
    %c0_30 = arith.constant 0 : index
    %35 = vector.load %arg6[%c0_29, %c0_30] : memref<16x128xf32, #tpu.memory_space<vmem>>, vector<16x128xf32>
    tpu.vector_store %arg6[%c0_29, %c0_30], %34 {strides = array<i32>} : memref<16x128xf32, #tpu.memory_space<vmem>>, vector<16x128xf32>,
    return
  }
}

</mosaic_0001>

<bundles_post_ra>
// kernel: gcnae_forward.1
= control target key start
LH: loop header
LB: loop body
LE: loop exit
PB: predicated region body
PF: predicated region fallthrough
CT: control target
= control target key end

     0   :  { %vm43_vm0 = vcmask 1046528   ;;  %vm44_vm1 = vcmask 1047552   ;;  %v237_v1 = vmov 65535   ;;  %vm39_vm2 = vcmask 121856   ;;  %s309_s2 = inlined_call_operand.vmem [shape: bf16[2,15,15], index: 2, kind: input, shape index: {}]   ;;  %s310_s1 = inlined_call_operand.vmem [shape: bf16[16,15], index: 1, kind: input, shape index: {}]   ;;  %s311_s3 = inlined_call_operand.vmem [shape: f32[2,1,15], index: 3, kind: input, shape index: {}]   ;;  %s312_s0 = inlined_call_operand.vmem [shape: bf16[16,16], index: 0, kind: input, shape index: {}]   ;;  %s313_s4 = inlined_call_operand.vmem [shape: bf16[15,128], index: 4, kind: input, shape index: {}]   ;;  %s314_s5 = inlined_call_operand.vmem [shape: f32[1,128], index: 5, kind: input, shape index: {}]   ;;  %s315_s6 = inlined_call_operand.vmem [shape: f32[16,128], index: 6, kind: output, shape index: {}]  }
   0x1   :  { %v229_v0 = vld [vmem:[%s309_s2] sm:$0xff]  ;;  %v45_v2 = vsel %vm43_vm0, 4294967295, %v237_v1  ;;  %vm75_vm3 = vcmask 130048   ;;  %v231_v10 = vld [vmem:[%s309_s2 + $0x8] sm:$0xff] }
   0x2   :  { %v46_v3 = vsel %vm44_vm1, %v45_v2, 0  ;;  %v228_v5 = vld [vmem:[%s310_s1] sm:$0xff] }
   0x3   :  { %v48_v4 = vand.u32 %v229_v0, %v46_v3  ;;  %v230_v9 = vld [vmem:[%s312_s0] sm:$0xff]  ;;  %v110_v11 = vand.u32 %v231_v10, %v46_v3 }
   0x4   :  { %v234_v13 = vld [vmem:[%s311_s3] ss:$0 sm:$0xff]  ;;  %v235_v26 = vld [vmem:[%s311_s3 + $0x1] ss:$0 sm:$0xff] }
   0x5   :  { %57 = vmatpush.bf16.msra.mxu0 %v48_v4  ;;  %119 = vmatpush.bf16.msra.mxu2 %v110_v11  ;;  %v232_v23 = vld [vmem:[%s313_s4] sm:$0xff] }
   0x6   :  { %v159_v24 = vand.u32 %v232_v23, %v46_v3  ;;  %v236_v36 = vld [vmem:[%s314_s5] ss:$0 sm:$0xff] }
   0x8   :  { %207 = vmatmul.msk.bf16.vlgmr.msra.gmra.mxu0 %vm39_vm2, %v228_v5 }
   0x9   :  { %168 = vmatpush.bf16.msrb.mxu0 %v159_v24 }
  0x85   :  { %v59_v6 = vpop.f32.mrf.mxu0 }
  0x8d   :  { %v61_v7 = vpop.f32.mrf.mxu0 }
  0x8e   :  { %v66_v8 = vpack.c.bf16 %v61_v7, %v59_v6 }
  0x90   :  { %86 = vmatpush.bf16.msra.mxu1 %v66_v8 }
  0x93   :  { %212 = vmatmul.msk.bf16.vlgmr.msra.gmra.mxu1 %vm75_vm3, %v230_v9 }
 0x110   :  { %v88_v12 = vpop.f32.mrf.mxu1 }
 0x111   :  { %v89_v14 = vadd.f32 %v234_v13, %v88_v12 }
 0x113   :  { %v93_v17 = vmax.f32 %v89_v14, 0.0 }
 0x118   :  { %v90_v15 = vpop.f32.mrf.mxu1 }
 0x119   :  { %v91_v16 = vadd.f32 %v234_v13, %v90_v15 }
 0x11b   :  { %v94_v18 = vmax.f32 %v91_v16, 0.0 }
 0x11d   :  { %v100_v19 = vpack.c.bf16 %v94_v18, %v93_v17 }
 0x11f   :  { %220 = vmatmul.msk.bf16.vlgmr.msra.gmra.mxu2 %vm39_vm2, %v100_v19 }
 0x1a2   :  { %v121_v20 = vpop.f32.mrf.mxu2 }
 0x1aa   :  { %v123_v21 = vpop.f32.mrf.mxu2 }
 0x1ab   :  { %v126_v22 = vpack.c.bf16 %v123_v21, %v121_v20 }
 0x1ad   :  { %137 = vmatpush.bf16.msra.mxu3 %v126_v22 }
 0x1b0   :  { %221 = vmatmul.msk.bf16.vlgmr.msra.gmra.mxu3 %vm75_vm3, %v230_v9 }
 0x233   :  { %v139_v25 = vpop.f32.mrf.mxu3 }
 0x234   :  { %v140_v27 = vadd.f32 %v235_v26, %v139_v25 }
 0x236   :  { %v144_v30 = vmax.f32 %v140_v27, 0.0 }
 0x23b   :  { %v141_v28 = vpop.f32.mrf.mxu3 }
 0x23c   :  { %v142_v29 = vadd.f32 %v235_v26, %v141_v28 }
 0x23e   :  { %v145_v31 = vmax.f32 %v142_v29, 0.0 }
 0x240   :  { %v149_v32 = vpack.c.bf16 %v145_v31, %v144_v30 }
 0x242   :  { %226 = vmatmul.msk.bf16.vlgmr.msrb.gmra.mxu0 %vm39_vm2, %v149_v32 }
 0x2bf   :  { %v170_v33 = vpop.f32.mrf.mxu0 }
 0x2c7   :  { %v172_v34 = vpop.f32.mrf.mxu0 }
 0x2c8   :  { %v175_v35 = vpack.c.bf16 %v172_v34, %v170_v33 }
 0x2ca   :  { %186 = vmatpush.bf16.msrb.mxu1 %v175_v35 }
 0x2cd   :  { %227 = vmatmul.msk.bf16.vlgmr.msrb.gmra.mxu1 %vm75_vm3, %v230_v9 }
 0x34a   :  { %v188_v37 = vpop.f32.mrf.mxu1 }
 0x34b   :  { %v189_v38 = vadd.f32 %v236_v36, %v188_v37 }
 0x34d   :  { %193 = vst [vmem:[%s315_s6] sm:$0xff] %v189_v38 }
 0x352   :  { %v190_v39 = vpop.f32.mrf.mxu1 }
 0x353   :  { %v191_v40 = vadd.f32 %v236_v36, %v190_v39 }
 0x355   :  { %194 = vst [vmem:[%s315_s6 + $0x8] sm:$0xff] %v191_v40 }

</bundles_post_ra>
